<compile_context>
chip_gen: v5e
topology: v5e:2x2
jax: 0.10.0
libtpu: 0.0.40
codegen_flags: <defaults>
</compile_context>

<pallas_src>
import jax
import jax.numpy as jnp
from jax.experimental import pallas as pl
from jax.experimental.pallas import tpu as pltpu


def _logreg_kernel(x_ref, w_ref, b_ref, o_ref):
    # x_ref: (tile_n, d) native dtype, w_ref: (d, 1) f32,
    # b_ref: (1,) f32 in SMEM, o_ref: (tile_n, 1) f32
    xv = x_ref[...].astype(jnp.float32)          # in-kernel cast (matches x.to(float32))
    z = jnp.dot(xv, w_ref[...], preferred_element_type=jnp.float32)
    z = z + b_ref[0]
    o_ref[...] = jax.nn.sigmoid(z)


def _round_up(a, m):
    return -(-a // m) * m


def logistic_regression_cln_forward(x, weight, bias, *, vmem_budget_bytes=8 * 1024 * 1024):
    """Pallas equivalent of LogisticRegressionCLN.forward.

    x:      (N, d) any float dtype (cast to f32 inside the kernel)
    weight: (1, d) float32  (nn.Linear(d, 1).weight layout)
    bias:   (1,)   float32  (nn.Linear(d, 1).bias)
    Returns (y_predicted, 0) with y_predicted of shape (N, 1) float32.
    """
    n, d = x.shape
    itemsize = jnp.dtype(x.dtype).itemsize

    # Largest row tile (multiple of 8) whose double-buffered x tile fits the budget.
    max_rows = max(8, vmem_budget_bytes // (2 * d * itemsize))
    tile_n = int(min(1024, (max_rows // 8) * 8))
    tile_n = max(8, min(tile_n, _round_up(n, 8)))   # don't over-tile tiny batches

    n_pad = _round_up(n, tile_n)
    if n_pad != n:
        x = jnp.pad(x, ((0, n_pad - n), (0, 0)))
    num_tiles = n_pad // tile_n

    w_t = weight.astype(jnp.float32).T            # (d, 1), stays resident in VMEM
    b = bias.astype(jnp.float32).reshape(1)       # (1,) scalar in SMEM

    y = pl.pallas_call(
        _logreg_kernel,
        out_shape=jax.ShapeDtypeStruct((n_pad, 1), jnp.float32),
        grid=(num_tiles,),
        in_specs=[
            pl.BlockSpec((tile_n, d), lambda i: (i, 0)),              # streamed x tiles
            pl.BlockSpec((d, 1), lambda i: (0, 0)),                   # resident weight
            pl.BlockSpec(memory_space=pltpu.MemorySpace.SMEM),        # scalar bias
        ],
        out_specs=pl.BlockSpec((tile_n, 1), lambda i: (i, 0)),
        compiler_params=pltpu.CompilerParams(
            dimension_semantics=("parallel",),                        # megacore on v7x
        ),
        cost_estimate=pl.CostEstimate(
            flops=2 * n_pad * d,
            transcendentals=n_pad,
            bytes_accessed=n_pad * d * itemsize + d * 4 + n_pad * 4,
        ),
    )(x, w_t, b)

    if n_pad != n:
        y = y[:n]
    return (y, 0)


if __name__ == "__main__":
    key = jax.random.PRNGKey(0)
    k_x, k_w, k_b = jax.random.split(key, 3)

    batch, d = 8, 32

    # Deterministic parameter init, mimicking nn.Linear(d, 1) uniform(-1/sqrt(d), 1/sqrt(d)).
    bound = 1.0 / jnp.sqrt(jnp.float32(d))
    weight = jax.random.uniform(k_w, (1, d), jnp.float32, -bound, bound)
    bias = jax.random.uniform(k_b, (1,), jnp.float32, -bound, bound)

    x = jax.random.normal(k_x, (batch, d), jnp.float32)

    y_pred, zero = logistic_regression_cln_forward(x, weight, bias)
    y_pred = jax.block_until_ready(y_pred)

    # Reference check in plain JAX.
    y_ref = jax.nn.sigmoid(x.astype(jnp.float32) @ weight.T + bias)
    assert y_pred.shape == (batch, 1)
    assert zero == 0
    assert jnp.allclose(y_pred, y_ref, atol=1e-5, rtol=1e-5)

    print("KERNEL_OK")
</pallas_src>

<mosaic_0001>
module attributes {stable_mosaic.version = 11 : i64} {
  func.func @_logreg_kernel(%arg0: i32, %arg1: memref<8x32xf32, #tpu.memory_space<vmem>>, %arg2: memref<32x1xf32, #tpu.memory_space<vmem>>, %arg3: memref<1xf32, #tpu.memory_space<smem>>, %arg4: memref<8x1xf32, #tpu.memory_space<vmem>>) attributes {dimension_semantics = [#tpu.dimension_semantics<parallel>], iteration_bounds = array<i64: 1>, scalar_prefetch = 0 : i64, scratch_operands = 0 : i64, tpu.core_type = #tpu.core_type<tc>, window_params = [{transform_indices = @transform_0, window_bounds = array<i64: 8, 32>}, {pipeline_mode = #tpu.pipeline_mode<synchronous>, transform_indices = @transform_1, window_bounds = array<i64: 32, 1>}, {transform_indices = @transform_2, window_bounds = array<i64: 1>}, {transform_indices = @transform_3, window_bounds = array<i64: 8, 1>}]} {
    %c0 = arith.constant 0 : index
    %c0_0 = arith.constant 0 : index
    %0 = vector.load %arg1[%c0, %c0_0] : memref<8x32xf32, #tpu.memory_space<vmem>>, vector<8x32xf32>
    %c0_1 = arith.constant 0 : index
    %c0_2 = arith.constant 0 : index
    %1 = vector.load %arg2[%c0_1, %c0_2] : memref<32x1xf32, #tpu.memory_space<vmem>>, vector<32x1xf32>
    %cst = arith.constant dense<0.000000e+00> : vector<8x1xf32>
    %2 = tpu.matmul %0, %1, %cst {dimension_numbers = #tpu.dot_dimension_numbers<[1], [0], [0], [1], [0, 0, 1, 1], [], []>} : vector<8x32xf32>, vector<32x1xf32>, vector<8x1xf32> -> vector<8x1xf32>
    %c0_3 = arith.constant 0 : index
    %3 = memref.load %arg3[%c0_3] : memref<1xf32, #tpu.memory_space<smem>>
    %4 = vector.broadcast %3 : f32 to vector<8x1xf32>
    %5 = arith.addf %2, %4 : vector<8x1xf32>
    %6 = arith.negf %5 : vector<8x1xf32>
    %7 = math.exp %6 : vector<8x1xf32>
    %cst_4 = arith.constant 1.000000e+00 : f32
    %8 = vector.broadcast %cst_4 : f32 to vector<8x1xf32>
    %9 = arith.addf %8, %7 : vector<8x1xf32>
    %10 = arith.divf %8, %9 : vector<8x1xf32>
    %c0_5 = arith.constant 0 : index
    %c0_6 = arith.constant 0 : index
    %11 = vector.load %arg4[%c0_5, %c0_6] : memref<8x1xf32, #tpu.memory_space<vmem>>, vector<8x1xf32>
    tpu.vector_store %arg4[%c0_5, %c0_6], %10 {strides = array<i32>} : memref<8x1xf32, #tpu.memory_space<vmem>>, vector<8x1xf32>,
    return
  }
  func.func @transform_0(%arg0: i32) -> (i32, i32) {
    %c0_i32 = arith.constant 0 : i32
    %c0_i32_0 = arith.constant 0 : i32
    return %arg0, %c0_i32 : i32, i32
  }
  func.func @transform_1(%arg0: i32) -> (i32, i32) {
    %c0_i32 = arith.constant 0 : i32
    %c0_i32_0 = arith.constant 0 : i32
    %c0_i32_1 = arith.constant 0 : i32
    return %c0_i32, %c0_i32_0 : i32, i32
  }
  func.func @transform_2(%arg0: i32) -> i32 {
    %c0_i32 = arith.constant 0 : i32
    %c0_i32_0 = arith.constant 0 : i32
    return %c0_i32 : i32
  }
  func.func @transform_3(%arg0: i32) -> (i32, i32) {
    %c0_i32 = arith.constant 0 : i32
    %c0_i32_0 = arith.constant 0 : i32
    return %arg0, %c0_i32 : i32, i32
  }
}

</mosaic_0001>

<bundles_post_ra>
// kernel: tpu_custom_call.1
= control target key start
LH: loop header
LB: loop body
LE: loop exit
PB: predicated region body
PF: predicated region fallthrough
CT: control target
= control target key end

     0   :  { %vm22_vm0 = vcmask 261120   ;;  %vm65_vm4 = vcmask 7168   ;;  %s118_s1 = inlined_call_operand.vmem [shape: f32[32,1], index: 1, kind: input, shape index: {}]   ;;  %s119_s0 = inlined_call_operand.vmem [shape: f32[8,32], index: 0, kind: input, shape index: {}]   ;;  %s120_s2 = inlined_call_operand.<no memory space> [shape: f32[1], index: 2, kind: input, shape index: {}]   ;;  %s121_s3 = inlined_call_operand.vmem [shape: f32[8,1], index: 3, kind: output, shape index: {}]  }
   0x1   :  { %v19_v0 = vld [vmem:[%s118_s1 + $0x18] sm:$0xff]  ;;  %v18_v1 = vld [vmem:[%s118_s1 + $0x10] sm:$0xff]  ;;  %v17_v2 = vld [vmem:[%s118_s1 + $0x8] sm:$0xff]  ;;  %v21_v5 = vstv %s120_s2 }
   0x2   :  { %38 = vmatpush.msra.mxu0 %v19_v0  ;;  %v16_v3 = vld [vmem:[%s118_s1] sm:$0xff] }
   0x3   :  { %v15_v4 = vld [vmem:[%s119_s0] sm:$0xff] }
   0x4   :  { %39 = vmatpush.msra.mxu0 %v18_v1 }
   0x6   :  { %40 = vmatpush.msra.mxu0 %v17_v2 }
   0x8   :  { %41 = vmatpush.msra.mxu0 %v16_v3 }
   0x9   :  { %71 = vmatmul.msk.f32.vlgmr.msra.gmra.mxu0 %vm22_vm0, %v15_v4 }
  0x86   :  { %v43_v6 = vpop.f32.mrf.mxu0 }
  0x87   :  { %v44_v7 = vadd.f32 %v43_v6, %v21_v5 }
  0x89   :  { %v72_v8 = vmul.f32 -1.442695, %v44_v7 }
  0x8b   :  { %73 = vpow2.f32 %v72_v8 }
  0x91   :  { %v74_v9 = vpop.eup %73 }
  0x92   :  { %v49_v10 = vadd.f32 1.0, %v74_v9 }
  0x94   :  { %75 = vrcp.f32 %v49_v10  ;;  %v61_v14 = vand.u32 2147483648, %v49_v10  ;;  %v59_v16 = vand.u32 2147483647, %v49_v10  ;;  %vm55_vm2 = vweird.f32 %v49_v10 }
  0x96   :  { %v62_v18 = vor.u32 1.1754944e-38, %v61_v14  ;;  %vm60_vm5 = vcmp.eq.f32.partialorder %v59_v16, 8.507059e+37 }
  0x9a   :  { %v76_v11 = vpop.eup %75 }
  0x9b   :  { %v51_v12 = vmul.f32 %v76_v11, %v49_v10  ;;  %vm56_vm1 = vweird.f32 %v76_v11 }
  0x9c   :  { %vm57_vm3 = vmor %vm55_vm2, %vm56_vm1 }
  0x9d   :  { %v52_v13 = vsub.f32 1.0, %v51_v12 }
  0x9f   :  { %v53_v15 = vmul.f32 %v76_v11, %v52_v13 }
  0xa1   :  { %v54_v17 = vadd.f32 %v76_v11, %v53_v15 }
  0xa3   :  { %v58_v19 = vsel %vm57_vm3, %v76_v11, %v54_v17 }
  0xa4   :  { %v63_v20 = vsel %vm60_vm5, %v62_v18, %v58_v19 }
  0xa5   :  { %66 = vst.msk [vmem:[%s121_s3] sm:$0xff] %vm65_vm4, %v63_v20 }

</bundles_post_ra>
